<compile_context>
chip_gen: v7x
topology: tpu7x:2x2x1
jax: 0.10.0
libtpu: 0.0.40
codegen_flags: <defaults>
</compile_context>

<pallas_src>
import functools

import jax
import jax.numpy as jnp
from jax.experimental import pallas as pl
from jax.experimental.pallas import tpu as pltpu


def _round_up(x, m):
    return ((x + m - 1) // m) * m


def _cdiv(a, b):
    return (a + b - 1) // b


def _roformer_output_kernel(h_ref, x_ref, w_ref, b_ref, scale_ref, o_ref,
                            acc_ref, *, d_model, eps):
    k = pl.program_id(1)

    @pl.when(k == 0)
    def _():
        # Fold the Linear bias into the accumulator init (saves a full
        # (tm, D) VPU add in the epilogue).
        acc_ref[...] = jnp.broadcast_to(
            b_ref[...].astype(jnp.float32), acc_ref.shape)

    # Partial matmul over this contraction tile; f32 accumulation on the MXU.
    acc_ref[...] += jnp.dot(h_ref[...], w_ref[...],
                            preferred_element_type=jnp.float32)

    @pl.when(k == pl.num_programs(1) - 1)
    def _():
        # Dropout(p=0) is the identity; add residual and RMS-normalize.
        y = acc_ref[...] + x_ref[...].astype(jnp.float32)
        # RMSNorm: scale * y / (||y||_2 * d^-0.5 + eps).  Padded (lane) columns
        # of y are exactly zero, so the reduction over the last axis is exact.
        norm = jnp.sqrt(jnp.sum(y * y, axis=-1, keepdims=True))
        rms = norm * (d_model ** -0.5)
        inv = pl.reciprocal(rms + eps, approx=False)   # exact, matches torch
        o_ref[...] = (scale_ref[...].astype(jnp.float32) * (y * inv)
                      ).astype(o_ref.dtype)


def roformer_output(hidden_states, input_tensor, weight_t, bias, scale,
                    *, eps=1e-8):
    """hidden_states: (B, S, F); input_tensor: (B, S, D)
       weight_t: (F, D)  (transposed PyTorch Linear weight)
       bias: (D,); scale: (D,)  (RMSNorm scale)
    """
    B, S, F = hidden_states.shape
    D = input_tensor.shape[-1]
    rows = B * S

    act_bytes = jnp.dtype(hidden_states.dtype).itemsize
    w_bytes = jnp.dtype(weight_t.dtype).itemsize
    sub = {4: 8, 2: 16, 1: 32}.get(act_bytes, 8)   # dtype-aware sublane align
    D_pad = _round_up(D, 128)                      # lane-dense output stores

    # ---- one-time lane-dense padding of parameters / residual -------------
    h2 = hidden_states.reshape(rows, F)
    x2 = input_tensor.reshape(rows, D)
    w2, b2, s2 = weight_t, bias, scale
    if D_pad != D:
        x2 = jnp.pad(x2, ((0, 0), (0, D_pad - D)))
        w2 = jnp.pad(w2, ((0, 0), (0, D_pad - D)))
        b2 = jnp.pad(b2, (0, D_pad - D))
        s2 = jnp.pad(s2, (0, D_pad - D))
    b2 = b2.reshape(1, D_pad)
    s2 = s2.reshape(1, D_pad)

    # ---- shape-adaptive tile selection -------------------------------------
    BUDGET = 40 << 20   # double-buffered blocks; safe within v7x's 64 MiB

    def vmem_need(tm_, tk_):
        return (2 * tm_ * tk_ * act_bytes          # activation blocks (2 buf)
                + 2 * tk_ * D_pad * w_bytes        # weight blocks (2 buf)
                + 2 * tm_ * D_pad * act_bytes      # residual blocks
                + 2 * tm_ * D_pad * act_bytes      # output blocks
                + tm_ * D_pad * 4                  # f32 accumulator scratch
                + 4 * D_pad * 4)                   # bias + scale

    def clamp_tm(tm_):
        tm_ = min(tm_, _round_up(rows, sub))
        if rows >= 2 * sub:                        # >=2 row tiles -> both TCs
            tm_ = min(tm_, _round_up((rows + 1) // 2, sub))
        return max(_round_up(tm_, sub), sub)

    tm = tk = None
    f_pad = F
    # Pass 1: whole-F contraction block -> the weight's block index is constant
    # across the whole grid, so it is fetched from HBM exactly once.
    for tm_c in (1024, 768, 512, 384, 256, 128):
        tm_e = clamp_tm(tm_c)
        if vmem_need(tm_e, F) <= BUDGET:
            tm, tk, f_pad = tm_e, F, F
            break
    if tm is None:
        # Pass 2: K-tiled weight streaming.  Maximize tm first: the weight
        # HBM re-fetch factor is rows/tm regardless of tk.
        tk_cands = [t for t in (1024, 512, 256, 128) if t < F]
        if not tk_cands:
            tk_cands = [_round_up(F, 128)]
        for tm_c in (1024, 512, 256, 128, 64, 32, 16, 8):
            tm_e = clamp_tm(tm_c)
            for tk_c in tk_cands:
                if vmem_need(tm_e, tk_c) <= BUDGET:
                    tm, tk = tm_e, tk_c
                    break
            if tm is not None:
                break
        if tm is None:                      # degenerate (enormous D)
            tm, tk = clamp_tm(sub), tk_cands[-1]
        f_pad = _round_up(F, tk)
        if f_pad != F:
            # K tail must be exact zeros on BOTH operands (rare fallback only).
            h2 = jnp.pad(h2, ((0, 0), (0, f_pad - F)))
            w2 = jnp.pad(w2, ((0, f_pad - F), (0, 0)))

    n_row = _cdiv(rows, tm)
    n_k = f_pad // tk
    grid = (n_row, n_k)

    # ---- VMEM limit: generous headroom, but never below the actual need ----
    need = vmem_need(tm, tk)
    vmem_limit = int(min(max(int(need * 1.25), 32 << 20), 56 << 20))
    vmem_limit = max(vmem_limit, need + (1 << 20))

    # ---- cost estimate reflecting actual HBM traffic -----------------------
    weight_fetches = 1 if n_k == 1 else n_row
    cost = pl.CostEstimate(
        flops=2 * rows * f_pad * D_pad + 8 * rows * D_pad,
        transcendentals=rows,
        bytes_accessed=(rows * f_pad * act_bytes
                        + weight_fetches * f_pad * D_pad * w_bytes
                        + 2 * rows * D_pad * act_bytes
                        + 2 * D_pad * 4),
    )

    kernel = functools.partial(_roformer_output_kernel, d_model=D, eps=eps)

    out = pl.pallas_call(
        kernel,
        out_shape=jax.ShapeDtypeStruct((rows, D_pad), hidden_states.dtype),
        grid_spec=pltpu.PrefetchScalarGridSpec(
            num_scalar_prefetch=0,
            grid=grid,
            in_specs=[
                pl.BlockSpec((tm, tk), lambda i, k: (i, k)),       # activations
                pl.BlockSpec((tm, D_pad), lambda i, k: (i, 0)),    # residual
                pl.BlockSpec((tk, D_pad), lambda i, k: (k, 0)),    # weight
                pl.BlockSpec((1, D_pad), lambda i, k: (0, 0)),     # bias
                pl.BlockSpec((1, D_pad), lambda i, k: (0, 0)),     # RMSNorm scale
            ],
            out_specs=pl.BlockSpec((tm, D_pad), lambda i, k: (i, 0)),
            scratch_shapes=[pltpu.VMEM((tm, D_pad), jnp.float32)],
        ),
        compiler_params=pltpu.CompilerParams(
            dimension_semantics=("parallel", "arbitrary"),
            vmem_limit_bytes=vmem_limit,
        ),
        cost_estimate=cost,
    )(h2, x2, w2, b2, s2)

    if D_pad != D:
        out = out[:, :D]
    return out.reshape(B, S, D)


def roformer_output_ref(hidden_states, input_tensor, weight_t, bias, scale,
                        eps=1e-8):
    y = jnp.einsum("bsf,fd->bsd", hidden_states.astype(jnp.float32),
                   weight_t.astype(jnp.float32)) + bias
    y = y + input_tensor.astype(jnp.float32)
    norm = jnp.linalg.norm(y, ord=2, axis=-1, keepdims=True)
    rms = norm * (y.shape[-1] ** -0.5)
    return scale * (y / (rms + eps))


if __name__ == "__main__":
    # small shapes consistent with the module
    B, S = 2, 8
    dim_feedforward, d_model = 64, 32

    key = jax.random.PRNGKey(0)
    k1, k2, k3, k4 = jax.random.split(key, 4)

    hidden_states = jax.random.normal(k1, (B, S, dim_feedforward), jnp.float32)
    input_tensor = jax.random.normal(k2, (B, S, d_model), jnp.float32)

    # deterministic parameter init (matching nn.Linear / RMSNorm param shapes)
    weight_t = (jax.random.normal(k3, (dim_feedforward, d_model), jnp.float32)
                * (1.0 / jnp.sqrt(dim_feedforward)))
    bias = jax.random.normal(k4, (d_model,), jnp.float32) * 0.01
    scale = jnp.ones((d_model,), jnp.float32)

    out = roformer_output(hidden_states, input_tensor, weight_t, bias, scale)
    out = jax.block_until_ready(out)

    ref = roformer_output_ref(hidden_states, input_tensor, weight_t, bias, scale)
    assert out.shape == (B, S, d_model)
    assert jnp.allclose(out, ref, atol=2e-3, rtol=2e-3), "mismatch vs reference"

    print("KERNEL_OK")
</pallas_src>

<mosaic_0001>
module attributes {stable_mosaic.version = 11 : i64} {
  func.func @_roformer_output_kernel(%arg0: i32, %arg1: i32, %arg2: memref<8x64xf32, #tpu.memory_space<vmem>>, %arg3: memref<8x128xf32, #tpu.memory_space<vmem>>, %arg4: memref<64x128xf32, #tpu.memory_space<vmem>>, %arg5: memref<1x128xf32, #tpu.memory_space<vmem>>, %arg6: memref<1x128xf32, #tpu.memory_space<vmem>>, %arg7: memref<8x128xf32, #tpu.memory_space<vmem>>, %arg8: memref<8x128xf32, #tpu.memory_space<vmem>>) attributes {dimension_semantics = [#tpu.dimension_semantics<parallel>, #tpu.dimension_semantics<arbitrary>], iteration_bounds = array<i64: 2, 1>, scalar_prefetch = 0 : i64, scratch_operands = 1 : i64, tpu.core_type = #tpu.core_type<tc>, window_params = [{transform_indices = @transform_0, window_bounds = array<i64: 8, 64>}, {transform_indices = @transform_1, window_bounds = array<i64: 8, 128>}, {transform_indices = @transform_2, window_bounds = array<i64: 64, 128>}, {pipeline_mode = #tpu.pipeline_mode<synchronous>, transform_indices = @transform_3, window_bounds = array<i64: 1, 128>}, {pipeline_mode = #tpu.pipeline_mode<synchronous>, transform_indices = @transform_4, window_bounds = array<i64: 1, 128>}, {transform_indices = @transform_5, window_bounds = array<i64: 8, 128>}]} {
    %c0_i32 = arith.constant 0 : i32
    %0 = arith.cmpi eq, %arg1, %c0_i32 : i32
    %1 = arith.extui %0 : i1 to i32
    %c0_i32_0 = arith.constant 0 : i32
    %2 = arith.cmpi ne, %1, %c0_i32_0 : i32
    scf.if %2 {
      %c0_10 = arith.constant 0 : index
      %c0_11 = arith.constant 0 : index
      %12 = vector.load %arg5[%c0_10, %c0_11] : memref<1x128xf32, #tpu.memory_space<vmem>>, vector<1x128xf32>
      %13 = vector.shape_cast %12 : vector<1x128xf32> to vector<1x128xf32>
      %14 = vector.broadcast %13 : vector<1x128xf32> to vector<8x128xf32>
      %c0_12 = arith.constant 0 : index
      %c0_13 = arith.constant 0 : index
      %15 = vector.load %arg8[%c0_12, %c0_13] : memref<8x128xf32, #tpu.memory_space<vmem>>, vector<8x128xf32>
      tpu.vector_store %arg8[%c0_12, %c0_13], %14 {strides = array<i32>} : memref<8x128xf32, #tpu.memory_space<vmem>>, vector<8x128xf32>,
    } else {
    }
    %c0 = arith.constant 0 : index
    %c0_1 = arith.constant 0 : index
    %3 = vector.load %arg8[%c0, %c0_1] : memref<8x128xf32, #tpu.memory_space<vmem>>, vector<8x128xf32>
    %c0_2 = arith.constant 0 : index
    %c0_3 = arith.constant 0 : index
    %4 = vector.load %arg2[%c0_2, %c0_3] : memref<8x64xf32, #tpu.memory_space<vmem>>, vector<8x64xf32>
    %c0_4 = arith.constant 0 : index
    %c0_5 = arith.constant 0 : index
    %5 = vector.load %arg4[%c0_4, %c0_5] : memref<64x128xf32, #tpu.memory_space<vmem>>, vector<64x128xf32>
    %cst = arith.constant dense<0.000000e+00> : vector<8x128xf32>
    %6 = tpu.matmul %4, %5, %cst {dimension_numbers = #tpu.dot_dimension_numbers<[1], [0], [0], [1], [0, 0, 1, 1], [], []>} : vector<8x64xf32>, vector<64x128xf32>, vector<8x128xf32> -> vector<8x128xf32>
    %7 = arith.addf %3, %6 : vector<8x128xf32>
    %c0_6 = arith.constant 0 : index
    %c0_7 = arith.constant 0 : index
    %8 = vector.load %arg8[%c0_6, %c0_7] : memref<8x128xf32, #tpu.memory_space<vmem>>, vector<8x128xf32>
    tpu.vector_store %arg8[%c0_6, %c0_7], %7 {strides = array<i32>} : memref<8x128xf32, #tpu.memory_space<vmem>>, vector<8x128xf32>,
    %c0_i32_8 = arith.constant 0 : i32
    %9 = arith.cmpi eq, %arg1, %c0_i32_8 : i32
    %10 = arith.extui %9 : i1 to i32
    %c0_i32_9 = arith.constant 0 : i32
    %11 = arith.cmpi ne, %10, %c0_i32_9 : i32
    scf.if %11 {
      %c0_10 = arith.constant 0 : index
      %c0_11 = arith.constant 0 : index
      %12 = vector.load %arg8[%c0_10, %c0_11] : memref<8x128xf32, #tpu.memory_space<vmem>>, vector<8x128xf32>
      %c0_12 = arith.constant 0 : index
      %c0_13 = arith.constant 0 : index
      %13 = vector.load %arg3[%c0_12, %c0_13] : memref<8x128xf32, #tpu.memory_space<vmem>>, vector<8x128xf32>
      %14 = arith.addf %12, %13 : vector<8x128xf32>
      %15 = arith.mulf %14, %14 : vector<8x128xf32>
      %cst_14 = arith.constant dense<0.000000e+00> : vector<8xf32>
      %16 = vector.multi_reduction <add>, %15, %cst_14 [1] : vector<8x128xf32> to vector<8xf32>
      %17 = vector.shape_cast %16 : vector<8xf32> to vector<8x1xf32>
      %18 = math.sqrt %17 : vector<8x1xf32>
      %cst_15 = arith.constant 0.176776692 : f32
      %19 = vector.broadcast %cst_15 : f32 to vector<8x1xf32>
      %20 = arith.mulf %18, %19 : vector<8x1xf32>
      %cst_16 = arith.constant 9.99999993E-9 : f32
      %21 = vector.broadcast %cst_16 : f32 to vector<8x1xf32>
      %22 = arith.addf %20, %21 : vector<8x1xf32>
      %23 = tpu.reciprocal %22 : vector<8x1xf32> -> vector<8x1xf32>
      %c0_17 = arith.constant 0 : index
      %c0_18 = arith.constant 0 : index
      %24 = vector.load %arg6[%c0_17, %c0_18] : memref<1x128xf32, #tpu.memory_space<vmem>>, vector<1x128xf32>
      %25 = vector.broadcast %23 : vector<8x1xf32> to vector<8x128xf32>
      %26 = arith.mulf %14, %25 : vector<8x128xf32>
      %27 = vector.broadcast %24 : vector<1x128xf32> to vector<8x128xf32>
      %28 = arith.mulf %27, %26 : vector<8x128xf32>
      %c0_19 = arith.constant 0 : index
      %c0_20 = arith.constant 0 : index
      %29 = vector.load %arg7[%c0_19, %c0_20] : memref<8x128xf32, #tpu.memory_space<vmem>>, vector<8x128xf32>
      tpu.vector_store %arg7[%c0_19, %c0_20], %28 {strides = array<i32>} : memref<8x128xf32, #tpu.memory_space<vmem>>, vector<8x128xf32>,
    } else {
    }
    return
  }
  func.func @transform_0(%arg0: i32, %arg1: i32) -> (i32, i32) {
    %c0_i32 = arith.constant 0 : i32
    return %arg0, %arg1 : i32, i32
  }
  func.func @transform_1(%arg0: i32, %arg1: i32) -> (i32, i32) {
    %c0_i32 = arith.constant 0 : i32
    %c0_i32_0 = arith.constant 0 : i32
    return %arg0, %c0_i32 : i32, i32
  }
  func.func @transform_2(%arg0: i32, %arg1: i32) -> (i32, i32) {
    %c0_i32 = arith.constant 0 : i32
    %c0_i32_0 = arith.constant 0 : i32
    return %arg1, %c0_i32 : i32, i32
  }
  func.func @transform_3(%arg0: i32, %arg1: i32) -> (i32, i32) {
    %c0_i32 = arith.constant 0 : i32
    %c0_i32_0 = arith.constant 0 : i32
    %c0_i32_1 = arith.constant 0 : i32
    return %c0_i32, %c0_i32_0 : i32, i32
  }
  func.func @transform_4(%arg0: i32, %arg1: i32) -> (i32, i32) {
    %c0_i32 = arith.constant 0 : i32
    %c0_i32_0 = arith.constant 0 : i32
    %c0_i32_1 = arith.constant 0 : i32
    return %c0_i32, %c0_i32_0 : i32, i32
  }
  func.func @transform_5(%arg0: i32, %arg1: i32) -> (i32, i32) {
    %c0_i32 = arith.constant 0 : i32
    %c0_i32_0 = arith.constant 0 : i32
    return %arg0, %c0_i32 : i32, i32
  }
}

</mosaic_0001>

<bundles_post_ra>
// kernel: tpu_custom_call.1
= control target key start
LH: loop header
LB: loop body
LE: loop exit
PB: predicated region body
PF: predicated region fallthrough
CT: control target
= control target key end

     0   :  { %s1197_s0 = inlined_call_operand.hbm [shape: f32[16,64], index: 0, kind: input, shape index: {}]   ;;  %s1198_s1 = inlined_call_operand.hbm [shape: f32[16,128], index: 1, kind: input, shape index: {}]   ;;  %s1199_s2 = inlined_call_operand.hbm [shape: f32[64,128], index: 2, kind: input, shape index: {}]   ;;  %s1200_s3 = inlined_call_operand.vmem [shape: f32[1,128], index: 3, kind: input, shape index: {}]   ;;  %s1201_s4 = inlined_call_operand.vmem [shape: f32[1,128], index: 4, kind: input, shape index: {}]   ;;  %s1202_s5 = inlined_call_operand.hbm [shape: f32[16,128], index: 5, kind: output, shape index: {}]  }
   0x1   :  { %1209 = sst [smem:[#allocation17_spill]] %s1199_s2 }
   0x2   :  { %10 = vsyncpa [#allocation4], 0 }
   0x3   :  { %12 = vsyncpa [#allocation4 + $0x1], 0 }
   0x4   :  { %13 = vsyncpa [#allocation7], 0 }
   0x5   :  { %15 = vsyncpa [#allocation7 + $0x1], 0 }
   0x6   :  { %16 = vsyncpa [#allocation5], 0 }
   0x7   :  { %18 = vsyncpa [#allocation5 + $0x1], 0  ;;  %s936_s18 = smov 0   ;;  %s938_s19 = smov 0  }
   0x8   :  { %s940_s20 = smov 0   ;;  %s942_s21 = smov 0  }
   0x9   :  { %s944_s22 = smov 0   ;;  %s946_s23 = smov 0  }
   0xa LB: > { %1210 = sst [smem:[#allocation14_spill]] %s891_s22  ;;  %s967_s24 = sadd.s32 4294967295, %s895_s23   ;;  %s895_s23 = sphi %s946_s23, %s24_s23   ;;  %s891_s22 = sphi %s944_s22, %s1231_s22   ;;  %s887_s21 = sphi %s942_s21, %s1230_s21   ;;  %s883_s20 = sphi %s940_s20, %s1234_s20   ;;  %s879_s19 = sphi %s938_s19, %s1233_s19   ;;  %s875_s18 = sphi %s936_s18, %s1232_s18  }
   0xb   : > { %s570_s25 = sadd.s32 4294967294, %s895_s23   ;;  %p58_p0 = scmp.ne.s32.totalorder %s879_s19, %s875_s18 }
   0xc   : > { %p1203_p1 = scmp.eq.s32.totalorder %s967_s24, 0  ;;  %p182_p3 = scmp.eq.s32.totalorder %s570_s25, 1 }
   0xd   : > { %p571_p5 = scmp.ge.s32.totalorder %s895_s23, 1  ;;  %p189_p7 = scmp.lt.s32.totalorder %s895_s23, 3 }
   0xe   : > { %p976_p4 = por %p1203_p1, %p58_p0  ;;  %p981_p6 = por %p182_p3, %p58_p0 }
   0xf   : > { %p986_p8 = pnand %p571_p5, %p189_p7  ;;  %s897_s29 = smov [#allocation8]  }
  0x10   : > { %s1211_s26 = scalar_select %p976_p4, 1, 0 }
  0x11   : > { %s1212_s27 = scalar_select %p981_p6, 1, 0 }
  0x12   : > { %s1213_s28 = scalar_select %p986_p8, 1, 0 }
  0x13   : > { %s204_s30 = sshll.u32 %s897_s29, 4  ;;  %p640_p9 = pneg %p986_p8  ;;  %s205_s30 = int_to_ptr.vmem [resolvable:$true] %s204_s30 }
  0x14   : > { %s36_s7 = sadd.s32 1, %s891_s22  ;;  %s1215_s2 = sld [smem:[#allocation17_spill]] }
  0x15   : > { %p995_p11 = pnand %p640_p9, %p1203_p1 }
  0x17   : > { %p719_p13 = pneg %p995_p11 }
  0x1a   : > { %s717_s10 = scalar_lea.hbm %s1215_s2, 1024 }
  0x1b   : > { %p718_p12 = scmp.ne.s32.totalorder %s1215_s2, %s717_s10  ;;  %p724_p5 = scmp.lt.u32.totalorder %s717_s10, %s1215_s2 }
  0x1d   : > { %p720_p0 = pnand %p719_p13, %p718_p12 }
  0x1f   : > { %p721_p3 = pneg %p720_p0 }
  0x21   : > { %p726_p7 = pnand %p724_p5, %p721_p3 }
  0x23   : > { %729 = shalt.err (!%p726_p7)
}
  0x24   : > { %s730_s15 = scalar_lea.vmem %s205_s30, 1024  ;;  %p738_p2 = scmp.lt.s32.totalorder %s205_s30, %s205_s30 }
  0x25   : > { %p731_p9 = scmp.ne.s32.totalorder %s205_s30, %s730_s15  ;;  %p739_p6 = scmp.lt.s32.totalorder %s730_s15, %s730_s15 }
  0x27   : > { %p733_p10 = pnand %p731_p9, %p719_p13  ;;  %p740_p4 = por %p739_p6, %p738_p2 }
  0x29   : > { %p734_p1 = pneg %p733_p10 }
  0x2b   : > { %p741_p8 = pnand %p740_p4, %p734_p1 }
  0x2d   : > { %744 = shalt.err (!%p741_p8)
}
  0x2e   : > { %s898_s16 = smov 128   ;;  %s899_s17 = smov 8  }
  0x2f   : > { %643 = dma.hbm_to_vmem [thread:$0]  (!%p995_p11), %s1215_s2, 1024, %s205_s30, [#allocation7], %s898_s16, %s898_s16, %s899_s17  }
  0x30   : > { %p38_p1 = scmp.ge.s32.totalorder %s36_s7, 2  ;;  %s45_s8 = sadd.s32 1, %s883_s20 }
  0x31   : > { %p52_p2 = scmp.ne.s32.totalorder %s883_s20, %s879_s19  ;;  %p53_p4 = scmp.eq.s32.totalorder %s895_s23, 0 }
  0x32   : > { %s1236_s7 = smov (%p38_p1, %s36_s7), 0  ;;  %p1218_p8 = scmp.eq.s32.totalorder %s967_s24, 1 }
  0x33   : > { %1216 = sst [smem:[#allocation15_spill]] %s1236_s7  ;;  %p1022_p6 = por %p53_p4, %p52_p2 }
  0x34   : > { %p1028_p10 = por %p1218_p8, %p52_p2  ;;  %s40_s10 = ssub.s32 %s891_s22, %s1236_s7 }
  0x35   : > { %p656_p11 = scmp.lt.s32.totalorder %s895_s23, 2  ;;  %p43_p12 = scmp.eq.s32.totalorder %s40_s10, 0 }
  0x36   : > { %s1219_s6 = scalar_select %p1028_p10, 1, 0 }
  0x37   : > { %s224_s30 = sand.u32 1, %s883_s20   ;;  %s575_s13 = sshll.u32 %s891_s22, 7 }
  0x38   : > { %s1036_s11 = sshll.u32 %s224_s30, 3  ;;  %s1045_s16 = scalar_lea.hbm %s1197_s0, %s575_s13 }
  0x39   : > { %s1039_s12 = scalar_select %p43_p12, %s883_s20, %s45_s8  }
  0x3a   : > { %s228_s17 = scalar_lea.vmem [#allocation3], %s1036_s11  ;;  %p1052_p13 = pnand %p656_p11, %p1022_p6 }
  0x3b   : > { %1220 = sst [smem:[#allocation16_spill]] %s1039_s12  ;;  %s236_s25 = sshll.u32 %s228_s17, 4  ;;  %s1048_s25 = int_to_ptr.vmem [resolvable:$true] %s236_s25 }
  0x3c   : > { %s1059_s14 = scalar_lea.hbm %s1198_s1, %s575_s13  ;;  %s243_s15 = sand.u32 1, %s895_s23  }
  0x3d   : > { %s225_s2 = scalar_lea.sflag [#allocation4], %s224_s30  ;;  %s745_s7 = scalar_lea.hbm %s1045_s16, 128 }
  0x3e   : > { %p746_p0 = scmp.ne.s32.totalorder %s1045_s16, %s745_s7  ;;  %p747_p3 = pneg %p1052_p13 }
  0x3f   : > { %s750_s22 = scalar_lea.hbm %s1197_s0, 256  ;;  %p751_p9 = scmp.lt.u32.totalorder %s1045_s16, %s1197_s0 }
  0x40   : > { %p748_p5 = pnand %p747_p3, %p746_p0  ;;  %p752_p1 = scmp.lt.u32.totalorder %s750_s22, %s745_s7 }
  0x41   : > { %p754_p4 = scmp.lt.u32.totalorder %s745_s7, %s1045_s16 }
  0x42   : > { %p749_p7 = pneg %p748_p5  ;;  %p753_p2 = por %p752_p1, %p751_p9 }
  0x44   : > { %p755_p6 = por %p754_p4, %p753_p2 }
  0x46   : > { %p756_p8 = pnand %p755_p6, %p749_p7 }
  0x48   : > { %759 = shalt.err (!%p756_p8)
}
  0x49   : > { %s760_s30 = scalar_lea.vmem %s1048_s25, 128  ;;  %s900_s13 = smov [#allocation3]  }
  0x4a   : > { %p761_p11 = scmp.ne.s32.totalorder %s1048_s25, %s760_s30  ;;  %s765_s10 = sshll.u32 %s900_s13, 4  ;;  %s766_s10 = int_to_ptr.vmem [resolvable:$false] %s765_s10 }
  0x4b   : > { %s767_s12 = scalar_lea.vmem %s766_s10, 256  ;;  %p768_p5 = scmp.lt.s32.totalorder %s1048_s25, %s766_s10 }
  0x4c   : > { %p763_p12 = pnand %p761_p11, %p747_p3  ;;  %p769_p9 = scmp.lt.s32.totalorder %s767_s12, %s760_s30 }
  0x4e   : > { %p764_p0 = pneg %p763_p12  ;;  %p770_p1 = por %p769_p9, %p768_p5 }
  0x50   : > { %p771_p2 = pnand %p770_p1, %p764_p0 }
  0x52   : > { %774 = shalt.err (!%p771_p2)
}
  0x53   : > { %647 = dma.hbm_to_vmem [thread:$0]  (!%p1052_p13), %s1045_s16, 128, %s1048_s25, %s225_s2  }
  0x54   : > { %s247_s22 = scalar_lea.vmem [#allocation6], %s1036_s11  ;;  %s244_s9 = scalar_lea.sflag [#allocation7], %s243_s15 }
  0x55   : > { %s254_s7 = sshll.u32 %s247_s22, 4  ;;  %s775_s17 = scalar_lea.hbm %s1059_s14, 128  ;;  %s255_s7 = int_to_ptr.vmem [resolvable:$true] %s254_s7 }
  0x56   : > { %p776_p7 = scmp.ne.s32.totalorder %s1059_s14, %s775_s17  ;;  %s780_s13 = scalar_lea.hbm %s1198_s1, 256 }
  0x57   : > { %p781_p8 = scmp.lt.u32.totalorder %s1059_s14, %s1198_s1  ;;  %p782_p11 = scmp.lt.u32.totalorder %s780_s13, %s775_s17 }
  0x58   : > { %p778_p4 = pnand %p776_p7, %p747_p3  ;;  %p784_p0 = scmp.lt.u32.totalorder %s775_s17, %s1059_s14 }
  0x59   : > { %p783_p12 = por %p782_p11, %p781_p8 }
  0x5a   : > { %p779_p6 = pneg %p778_p4 }
  0x5b   : > { %p785_p5 = por %p784_p0, %p783_p12 }
  0x5d   : > { %p786_p9 = pnand %p785_p5, %p779_p6 }
  0x5f   : > { %789 = shalt.err (!%p786_p9)
}
  0x60   : > { %s790_s2 = scalar_lea.vmem %s255_s7, 128  ;;  %s901_s11 = smov [#allocation6]  }
  0x61   : > { %p791_p1 = scmp.ne.s32.totalorder %s255_s7, %s790_s2  ;;  %s795_s16 = sshll.u32 %s901_s11, 4  ;;  %s796_s16 = int_to_ptr.vmem [resolvable:$false] %s795_s16 }
  0x62   : > { %s797_s25 = scalar_lea.vmem %s796_s16, 256  ;;  %p798_p4 = scmp.lt.s32.totalorder %s255_s7, %s796_s16 }
  0x63   : > { %p793_p2 = pnand %p791_p1, %p747_p3  ;;  %p799_p10 = scmp.lt.s32.totalorder %s797_s25, %s790_s2 }
  0x65   : > { %p794_p7 = pneg %p793_p2  ;;  %p800_p8 = por %p799_p10, %p798_p4 }
  0x67   : > { %p801_p11 = pnand %p800_p8, %p794_p7 }
  0x69   : > { %804 = shalt.err (!%p801_p11)
}
  0x6a   : > { %650 = dma.hbm_to_vmem [thread:$0]  (!%p1052_p13), %s1059_s14, 128, %s255_s7, %s244_s9  }
  0x6b   : > { %p1222_p6 = scmp.ne.s32.totalorder %s1213_s28, 0 }
  0x6c   : > { %s1112_s15 = sand.u32 (!%p1222_p6), 1, %s879_s19   ;;  %p1223_p10 = scmp.ne.s32.totalorder (!%p1222_p6), %s1211_s26, 0 }
  0x6d   : > { %263 = sbr.rel (%p1222_p6) target bundleno = 549 (0x225), region = 40  ;;  %s1115_s22 = sshll.u32 (!%p1222_p6), %s1112_s15, 3 }
  0x6e   : > { %s266_s17 = scalar_lea.sflag (!%p1222_p6), [#allocation4], %s1112_s15  ;;  %s269_s8 = scalar_lea.vmem (!%p1222_p6), [#allocation3], %s1115_s22 }
  0x74   : > { %858 = dma.done.wait (%p1223_p10), %s266_s17, 128  }
  0x75   : > { %860 = vsyncadd (%p1223_p10), %s266_s17, 4294967168  ;;  %s274_s28 = sand.u32 1, %s967_s24   ;;  %s278_s14 = scalar_lea.vmem [#allocation6], %s1115_s22 }
  0x76   : > { %s275_s29 = scalar_lea.sflag [#allocation7], %s274_s28 }
  0x77   : > { %862 = dma.done.wait (%p1223_p10), %s275_s29, 128  }
  0x78   : > { %864 = vsyncadd (%p1223_p10), %s275_s29, 4294967168  ;;  %p1224_p13 = scmp.eq.s32.totalorder %s967_s24, 0 }
  0x7a   : > { %866 = dma.done.wait (%p1224_p13), [#allocation7], 1024   ;;  %p1225_p3 = pmov %p1224_p13 }
  0x7b   : > { %v902_v0 = vmov 0.0|0.0   ;;  %vm903_vm0 = vmmov 0   ;;  %v904_v1 = vmov 0.0   ;;  %v329_v2 = vld [vmem:[#allocation8] sm:$0xff]  ;;  %v330_v3 = vld [vmem:[#allocation8 + $0x8] sm:$0xff]  ;;  %v331_v4 = vld [vmem:[#allocation8 + $0x10] sm:$0xff] }
  0x7c   : > { %868 = vsyncadd (%p1225_p3), [#allocation7], 4294966272  ;;  %618 = vmatprep.subr.bf16.mxu0 %v902_v0  ;;  %615 = vmatprep.mubr.msk.f32.mxu0 %vm903_vm0, %v904_v1  ;;  %v619_v5 = vpack.c.bf16 %v330_v3, %v329_v2  ;;  %v332_v6 = vld [vmem:[#allocation8 + $0x18] sm:$0xff]  ;;  %v333_v8 = vld [vmem:[#allocation8 + $0x20] sm:$0xff]  ;;  %vm337_vm1 = vcmask 523264   ;;  %s587_s30 = sshll.u32 %s887_s21, 7 }
  0x7d   : > { %v622_v7 = vpack.c.bf16 %v332_v6, %v331_v4  ;;  %v334_v9 = vld [vmem:[#allocation8 + $0x28] sm:$0xff]  ;;  %v335_v11 = vld [vmem:[#allocation8 + $0x30] sm:$0xff]  ;;  %v336_v12 = vld [vmem:[#allocation8 + $0x38] sm:$0xff]  ;;  %s313_s13 = scalar_lea.vmem [#allocation9], %s1115_s22  ;;  %s1148_s11 = scalar_lea.hbm %s1202_s5, %s587_s30 }
  0x7e   : > { %620 = vmatpush3.bf16.msra.mxu0 %v619_v5  ;;  %v625_v10 = vpack.c.bf16 %v334_v9, %v333_v8  ;;  %v628_v13 = vpack.c.bf16 %v336_v12, %v335_v11  ;;  %v328_v14 = vld [vmem:[%s269_s8] sm:$0xff]  ;;  %v417_v17 = vld [vmem:[%s278_s14] sm:$0xff]  ;;  %s456_s10 = sshll.u32 %s313_s13, 4  ;;  %s443_s16 = scalar_lea.sflag [#allocation5], %s1112_s15  ;;  %s1150_s10 = int_to_ptr.vmem [resolvable:$true] %s456_s10 }
  0x7f   : > { %621 = vmatprep.subr.bf16.mxu0 %v902_v0  ;;  %v583_v15 = vld [vmem:[%s1200_s3] ss:$0 sm:$0xff]  ;;  %s805_s25 = scalar_lea.vmem %s1150_s10, 128  ;;  %p1226_p0 = scmp.ne.s32.totalorder %s1219_s6, 0 }
  0x80   : > { %v585_v31 = vld [vmem:[%s1201_s4] ss:$0 sm:$0xff]  ;;  %p806_p12 = scmp.ne.s32.totalorder %s1150_s10, %s805_s25  ;;  %s905_s21 = smov [#allocation9]  }
  0x81   : > { %s809_s22 = sshll.u32 %s905_s21, 4  ;;  %s810_s22 = int_to_ptr.vmem [resolvable:$false] %s809_s22 }
  0x82   : > { %623 = vmatpush3.bf16.msra.mxu0 %v622_v7  ;;  %p807_p5 = pnand %p806_p12, %p1226_p0  ;;  %s811_s17 = scalar_lea.vmem %s810_s22, 256 }
  0x83   : > { %624 = vmatprep.subr.bf16.mxu0 %v902_v0  ;;  %p812_p1 = scmp.lt.s32.totalorder %s1150_s10, %s810_s22  ;;  %p813_p2 = scmp.lt.s32.totalorder %s811_s17, %s805_s25 }
  0x84   : > { %p808_p9 = pneg %p807_p5 }
  0x85   : > { %p814_p7 = por %p813_p2, %p812_p1 }
  0x86   : > { %626 = vmatpush3.bf16.msra.mxu0 %v625_v10 }
  0x87   : > { %627 = vmatprep.subr.bf16.mxu0 %v902_v0  ;;  %p815_p4 = pnand %p814_p7, %p808_p9 }
  0x8a   : > { %629 = vmatpush3.bf16.msra.mxu0 %v628_v13 }
  0x8d   : > { %616 = vmatmul.mubr.msk.f32.vlgmr.msra.gmra.mrb[0].mxu0 %vm337_vm1, %v328_v14 }
 0x160   : > { %v407_v16 = vpop.f32.mrb[0].mxu0 }
 0x161   : > { %v411_v18 = vadd.f32 %v583_v15, %v407_v16  ;;  %v617_v19 = vpop.f32.mrb[1].mxu0 }
 0x163   : > { %v418_v20 = vadd.f32 %v417_v17, %v411_v18 }
 0x165   : > { %v419_v21 = vmul.f32 %v418_v20, %v418_v20 }
 0x167   : > { %420 = vadd.xlane.f32.xlu0 %v419_v21 }
 0x1f4   : > { %v421_v22 = vpop.xlane.xlu0 %420 }
 0x1f5   : > { %713 = vrsqrt.f32 %v421_v22  ;;  %vm424_vm2 = vcmp.eq.f32.partialorder %v421_v22, inf  ;;  %v427_v25 = vand.u32 2147483648, %v421_v22  ;;  %vm426_vm3 = vcmp.eq.f32.partialorder %v421_v22, 0.0 }
 0x1ff   : > { %v714_v23 = vpop.eup %713 }
 0x200   : > { %v423_v24 = vmul.f32 %v714_v23, %v421_v22 }
 0x202   : > { %v425_v26 = vsel %vm424_vm2, %v421_v22, %v423_v24 }
 0x203   : > { %v428_v27 = vsel %vm426_vm3, %v427_v25, %v425_v26 }
 0x204   : > { %v429_v28 = vmul.f32 0.17677669, %v428_v27 }
 0x206   : > { %v430_v29 = vadd.f32 1e-08, %v429_v28 }
 0x208   : > { %715 = vrcp.f32 %v430_v29 }
 0x212   : > { %v716_v30 = vpop.eup %715 }
 0x213   : > { %v433_v32 = vmul.f32 %v716_v30, %v418_v20 }
 0x215   : > { %v440_v33 = vmul.f32 %v585_v31, %v433_v32 }
 0x217   : > { %441 = vst [vmem:[%s313_s13] sm:$0xff] %v440_v33 }
 0x218   : > { %818 = shalt.err (!%p815_p4)
}
 0x219   : > { %s819_s15 = scalar_lea.hbm %s1148_s11, 128  ;;  %s823_s29 = scalar_lea.hbm %s1202_s5, 256 }
 0x21a   : > { %p820_p8 = scmp.ne.s32.totalorder %s1148_s11, %s819_s15  ;;  %p824_p10 = scmp.lt.u32.totalorder %s1148_s11, %s1202_s5 }
 0x21b   : > { %p825_p13 = scmp.lt.u32.totalorder %s823_s29, %s819_s15  ;;  %p827_p12 = scmp.lt.u32.totalorder %s819_s15, %s1148_s11 }
 0x21c   : > { %p821_p11 = pnand %p820_p8, %p1226_p0 }
 0x21d   : > { %p826_p3 = por %p825_p13, %p824_p10 }
 0x21e   : > { %p822_p6 = pneg %p821_p11 }
 0x21f   : > { %p828_p5 = por %p827_p12, %p826_p3 }
 0x221   : > { %p829_p9 = pnand %p828_p5, %p822_p6 }
 0x223   : > { %832 = shalt.err (!%p829_p9)
}
 0x224   : > { %638 = dma.vmem_to_hbm [thread:$0]  (%p1226_p0), %s1150_s10, 128, %s1148_s11, %s443_s16  }
 0x225 PF: > { %s468_s26 = sand.u32 1, %s875_s18   ;;  %p1227_p1 = scmp.ne.s32.totalorder %s1212_s27, 0 }
 0x226   : > { %p1228_p2 = scmp.ge.s32.totalorder %s895_s23, 2  ;;  %s469_s7 = scalar_lea.sflag [#allocation5], %s468_s26 }
 0x228   : > { %p652_p7 = pnand %p1228_p2, %p1227_p1 }
 0x22a   : > { %870 = dma.done.wait (!%p652_p7), %s469_s7, 128  }
 0x22b   : > { %872 = vsyncadd (!%p652_p7), %s469_s7, 4294967168  ;;  %s24_s23 = sadd.s32 1, %s895_s23   ;;  %s1229_s6 = sld [smem:[#allocation16_spill]] }
 0x22c   : > { %p21_p4 = scmp.ge.s32.totalorder %s24_s23, 4   ;;  %s1230_s21 = sld [smem:[#allocation14_spill]] }
 0x22d   : > { %s1231_s22 = sld [smem:[#allocation15_spill]]  ;;  %s1232_s18 = smov %s879_s19 }
 0x22e   : > { %s1233_s19 = smov %s883_s20  ;;  %23 = sbr.rel (!%p21_p4) target bundleno = 10 (0xa), region = 111 }
 0x231   : > { %s1234_s20 = smov %s1229_s6 }
 0x235   :  { %474 = vsyncpa [#allocation4], 1 }
 0x236   :  { %476 = vsyncpa [#allocation4 + $0x1], 1 }
 0x237   :  { %477 = vsyncpa [#allocation7], 1 }
 0x238   :  { %479 = vsyncpa [#allocation7 + $0x1], 1 }
 0x239   :  { %480 = vsyncpa [#allocation5], 1 }
 0x23a   :  { %482 = vsyncpa [#allocation5 + $0x1], 1 }

</bundles_post_ra>
